<compile_context>
chip_gen: v5e
topology: v5e:2x2
jax: 0.10.0
libtpu: 0.0.40
codegen_flags: <defaults>
</compile_context>

<pallas_src>
import math

import jax
import jax.numpy as jnp
from jax.experimental import pallas as pl
from jax.experimental.pallas import tpu as pltpu


# ---------------------------------------------------------------------------
# Buffer construction (plain JAX glue — matches nn.Module.__init__)
# ---------------------------------------------------------------------------
def build_pe_table(max_len: int, d_model: int) -> jnp.ndarray:
    """pe[max_len, d_model] with interleaved sin/cos, identical to the torch code."""
    position = jnp.arange(max_len, dtype=jnp.float32)[:, None]            # [max_len, 1]
    div_term = jnp.exp(
        jnp.arange(0, d_model, 2, dtype=jnp.float32) * (-math.log(10000.0) / d_model)
    )                                                                      # [d_model//2]
    angles = position * div_term                                           # [max_len, d_model//2]
    pe = jnp.zeros((max_len, d_model), dtype=jnp.float32)
    pe = pe.at[:, 0::2].set(jnp.sin(angles))
    pe = pe.at[:, 1::2].set(jnp.cos(angles))
    return pe


# ---------------------------------------------------------------------------
# Pallas kernel: lane-dense elementwise  out[s, :] = x[s, :] + pe_row[:]
# ---------------------------------------------------------------------------
def pe_add_kernel(x_ref, pe_ref, o_ref):
    # x_ref : [tile_s, N]   pe_ref : [1, N]   (sublane-broadcast add, one pe vreg row live)
    o_ref[...] = x_ref[...] + pe_ref[...]


def _choose_tile_s(S: int, row_bytes: int, target_block_bytes: int = 2 * 1024 * 1024) -> int:
    """Largest divisor of S giving ~target-sized blocks, sublane-aligned, >=2 grid steps if possible."""
    max_rows = max(1, target_block_bytes // max(row_bytes, 1))
    divisors = [t for t in range(1, S + 1) if S % t == 0]
    cands = [t for t in divisors if t <= max_rows and (t % 8 == 0 or t == S)]
    if not cands:
        cands = [t for t in divisors if t <= max_rows] or [1]
    # Prefer >=2 grid steps: enables software pipelining and dual-TC sharding on v7x.
    multi = [t for t in cands if S // t >= 2]
    return max(multi) if multi else max(cands)


def positional_encoding_forward(
    x: jnp.ndarray,
    pe_table: jnp.ndarray,
    *,
    tile_s: int | None = None,
    use_pallas: bool | None = None,
    donate_input: bool = True,
) -> jnp.ndarray:
    """x: [S, B, D] (seq, batch, embed).  Returns x + pe[:, :B] broadcast over S (eval-mode dropout).

    NOTE: the pe slice intentionally uses the *batch* dimension to reproduce the
    upstream PyTorch quirk; callers must pass [seq, batch, embed] tensors.
    """
    S, B, D = x.shape
    max_len = pe_table.shape[0]
    assert B <= max_len, f"batch ({B}) must be <= max_len ({max_len}) for pe[:, :batch] slice"

    N = B * D
    itemsize = jnp.dtype(x.dtype).itemsize

    total_bytes = S * N * itemsize
    if use_pallas is None:
        # Below ~1 MiB a pallas_call is pure launch overhead; let XLA fuse the add.
        use_pallas = total_bytes >= (1 << 20)
    if not use_pallas:
        return x + pe_table[None, :B, :].astype(x.dtype)

    # Lane-dense flatten: [S, B, D] -> [S, B*D]; pe quirk-slice -> [1, B*D] in x's dtype.
    x_flat = x.reshape(S, N)
    pe_flat = pe_table[:B, :].astype(x.dtype).reshape(1, N)

    row_bytes = N * itemsize
    if tile_s is None:
        tile_s = _choose_tile_s(S, row_bytes)
    assert S % tile_s == 0, "tile_s must divide S"
    grid = (S // tile_s,)

    # VMEM budget: x-in + out double-buffered blocks + pe + margin, capped for v7x's 64 MiB.
    block_bytes = tile_s * row_bytes
    vmem_need = 2 * (2 * block_bytes) + 2 * row_bytes + (1 << 20)
    vmem_limit = int(min(max(vmem_need, 8 << 20), 64 << 20))

    out_flat = pl.pallas_call(
        pe_add_kernel,
        out_shape=jax.ShapeDtypeStruct((S, N), x.dtype),
        grid_spec=pltpu.PrefetchScalarGridSpec(
            num_scalar_prefetch=0,
            grid=grid,
            in_specs=[
                # Last block dim equals the full (lane-dense) array dim -> unmasked stores.
                pl.BlockSpec((tile_s, N), lambda i: (i, 0)),
                pl.BlockSpec((1, N), lambda i: (0, 0)),
            ],
            out_specs=pl.BlockSpec((tile_s, N), lambda i: (i, 0)),
        ),
        compiler_params=pltpu.CompilerParams(
            dimension_semantics=("parallel",),
            vmem_limit_bytes=vmem_limit,
        ),
        # In-place elementwise add: reuse x's HBM buffer for the output.
        input_output_aliases=({0: 0} if donate_input else {}),
    )(x_flat, pe_flat)

    return out_flat.reshape(S, B, D)


# ---------------------------------------------------------------------------
# Demo / self-check
# ---------------------------------------------------------------------------
if __name__ == "__main__":
    # Module config
    MAX_LEN = 32
    D_MODEL = 32
    # Input: [sequence length, batch size, embed dim]; B*D = 128 -> full lane-dense rows.
    S, B, D = 16, 4, D_MODEL

    key = jax.random.PRNGKey(0)
    x = jax.random.normal(key, (S, B, D), dtype=jnp.float32)

    pe_table = build_pe_table(MAX_LEN, D_MODEL)

    # Force the Pallas path at this demo size; tile_s=8 gives a 2-step parallel grid.
    out = positional_encoding_forward(x, pe_table, tile_s=8, use_pallas=True)
    out = jax.block_until_ready(out)

    # Pure-JAX reference of the exact torch forward (eval mode: dropout = identity).
    ref = x + pe_table[None, :B, :]  # == x + pe[:, :x.size(1)]
    assert out.shape == (S, B, D)
    assert out.dtype == jnp.float32
    assert jnp.allclose(out, ref, atol=1e-6, rtol=1e-6), "mismatch vs reference"

    print("KERNEL_OK")
</pallas_src>

<mosaic_0001>
module attributes {stable_mosaic.version = 11 : i64} {
  func.func @pe_add_kernel(%arg0: i32, %arg1: memref<8x128xf32, #tpu.memory_space<vmem>>, %arg2: memref<1x128xf32, #tpu.memory_space<vmem>>, %arg3: memref<8x128xf32, #tpu.memory_space<vmem>>) attributes {dimension_semantics = [#tpu.dimension_semantics<parallel>], iteration_bounds = array<i64: 2>, scalar_prefetch = 0 : i64, scratch_operands = 0 : i64, tpu.core_type = #tpu.core_type<tc>, window_params = [{transform_indices = @transform_0, window_bounds = array<i64: 8, 128>}, {pipeline_mode = #tpu.pipeline_mode<synchronous>, transform_indices = @transform_1, window_bounds = array<i64: 1, 128>}, {transform_indices = @transform_2, window_bounds = array<i64: 8, 128>}]} {
    %c0 = arith.constant 0 : index
    %c0_0 = arith.constant 0 : index
    %0 = vector.load %arg1[%c0, %c0_0] : memref<8x128xf32, #tpu.memory_space<vmem>>, vector<8x128xf32>
    %c0_1 = arith.constant 0 : index
    %c0_2 = arith.constant 0 : index
    %1 = vector.load %arg2[%c0_1, %c0_2] : memref<1x128xf32, #tpu.memory_space<vmem>>, vector<1x128xf32>
    %2 = vector.broadcast %1 : vector<1x128xf32> to vector<8x128xf32>
    %3 = arith.addf %0, %2 : vector<8x128xf32>
    %c0_3 = arith.constant 0 : index
    %c0_4 = arith.constant 0 : index
    %4 = vector.load %arg3[%c0_3, %c0_4] : memref<8x128xf32, #tpu.memory_space<vmem>>, vector<8x128xf32>
    tpu.vector_store %arg3[%c0_3, %c0_4], %3 {strides = array<i32>} : memref<8x128xf32, #tpu.memory_space<vmem>>, vector<8x128xf32>,
    return
  }
  func.func @transform_0(%arg0: i32) -> (i32, i32) {
    %c0_i32 = arith.constant 0 : i32
    %c0_i32_0 = arith.constant 0 : i32
    return %arg0, %c0_i32 : i32, i32
  }
  func.func @transform_1(%arg0: i32) -> (i32, i32) {
    %c0_i32 = arith.constant 0 : i32
    %c0_i32_0 = arith.constant 0 : i32
    %c0_i32_1 = arith.constant 0 : i32
    return %c0_i32, %c0_i32_0 : i32, i32
  }
  func.func @transform_2(%arg0: i32) -> (i32, i32) {
    %c0_i32 = arith.constant 0 : i32
    %c0_i32_0 = arith.constant 0 : i32
    return %arg0, %c0_i32 : i32, i32
  }
}

</mosaic_0001>

<bundles_post_ra>
// kernel: tpu_custom_call.1
= control target key start
LH: loop header
LB: loop body
LE: loop exit
PB: predicated region body
PF: predicated region fallthrough
CT: control target
= control target key end

     0   :  { %7 = vsyncpa [#allocation3], 0  ;;  %s556_s0 = inlined_call_operand.hbm [shape: f32[16,128], index: 0, kind: input, shape index: {}, may-alias: {0,2}]   ;;  %s557_s1 = inlined_call_operand.vmem [shape: f32[1,128], index: 1, kind: input, shape index: {}]   ;;  %s558_s2 = inlined_call_operand.hbm [shape: f32[16,128], index: 2, kind: output, shape index: {}, may-alias: {0,2}]  }
   0x1   :  { %9 = vsyncpa [#allocation3 + $0x1], 0 }
   0x2   :  { %10 = vsyncpa [#allocation4], 0 }
   0x3   :  { %12 = vsyncpa [#allocation4 + $0x1], 0  ;;  %s426_s9 = smov 0   ;;  %s428_s10 = smov 0  }
   0x4   :  { %s430_s11 = smov 0   ;;  %s432_s12 = smov 0  }
   0x5 LB: > { %s447_s13 = sadd.s32 4294967295, %s409_s12   ;;  %s254_s14 = sadd.s32 4294967294, %s409_s12   ;;  %s409_s12 = sphi %s432_s12, %s568_s12   ;;  %s405_s11 = sphi %s430_s11, %s567_s11   ;;  %s401_s10 = sphi %s428_s10, %s566_s10   ;;  %s397_s9 = sphi %s426_s9, %s565_s9  }
   0x6   : > { %s451_s15 = sadd.s32 1, %s409_s12   ;;  %s25_s16 = sadd.s32 1, %s405_s11 }
   0x7   : > { %s22_s17 = ssub.s32 %s409_s12, %s451_s15  ;;  %p32_p0 = scmp.ne.s32.totalorder %s405_s11, %s401_s10 }
   0x8   : > { %p23_p1 = scmp.eq.s32.totalorder %s22_s17, 0  ;;  %p33_p2 = scmp.eq.s32.totalorder %s409_s12, 0 }
   0x9   : > { %p38_p3 = scmp.ne.s32.totalorder %s401_s10, %s397_s9  ;;  %p39_p4 = scmp.eq.s32.totalorder %s447_s13, 0 }
   0xa   : > { %s463_s18 = scalar_select %p23_p1, %s405_s11, %s25_s16  }
   0xb   : > { %p465_p5 = por %p33_p2, %p32_p0  ;;  %p469_p6 = por %p39_p4, %p38_p3 }
   0xc   : > { %p83_p7 = scmp.eq.s32.totalorder %s447_s13, 1  ;;  %p89_p8 = scmp.eq.s32.totalorder %s254_s14, 1 }
   0xd   : > { %p278_p10 = scmp.lt.s32.totalorder %s409_s12, 2  ;;  %s112_s23 = sand.u32 1, %s405_s11  }
   0xe   : > { %p476_p11 = por %p83_p7, %p32_p0  ;;  %p480_p12 = por %p89_p8, %p38_p3 }
   0xf   : > { %s258_s24 = sshll.u32 %s409_s12, 3  ;;  %s257_s25 = sshll.u32 %s112_s23, 3 }
  0x10   : > { %s120_s28 = scalar_lea.hbm %s556_s0, %s258_s24  ;;  %s116_s30 = scalar_lea.vmem [#allocation2], %s257_s25 }
  0x11   : > { %s122_s29 = sshll.u32 %s120_s28, 4  ;;  %s124_s3 = sshll.u32 %s116_s30, 4  ;;  %s123_s29 = int_to_ptr.hbm [resolvable:$true] %s122_s29  ;;  %s125_s3 = int_to_ptr.vmem [resolvable:$true] %s124_s3 }
  0x12   : > { %p491_p13 = pnand %p278_p10, %p465_p5  ;;  %p259_p0 = scmp.ge.s32.totalorder %s409_s12, 1 }
  0x13   : > { %p129_p1 = scmp.lt.s32.totalorder %s409_s12, 3  ;;  %s113_s5 = scalar_lea.sflag [#allocation3], %s112_s23 }
  0x14   : > { %s313_s6 = sshra.s32 %s123_s29, 4  ;;  %p317_p3 = pneg %p491_p13  ;;  %s314_s6 = int_to_ptr.hbm [resolvable:$true] %s313_s6 }
  0x15   : > { %s315_s7 = scalar_lea.hbm %s314_s6, 8  ;;  %s320_s16 = scalar_lea.hbm %s556_s0, 16 }
  0x16   : > { %p316_p2 = scmp.ne.s32.totalorder %s314_s6, %s315_s7  ;;  %p321_p5 = scmp.lt.s32.totalorder %s314_s6, %s556_s0 }
  0x17   : > { %p322_p8 = scmp.lt.s32.totalorder %s320_s16, %s315_s7 }
  0x18   : > { %p318_p4 = pnand %p317_p3, %p316_p2 }
  0x19   : > { %p323_p10 = por %p322_p8, %p321_p5 }
  0x1a   : > { %p319_p7 = pneg %p318_p4 }
  0x1c   : > { %p324_p9 = pnand %p323_p10, %p319_p7 }
  0x1e   : > { %327 = shalt.err (!%p324_p9)
}
  0x1f   : > { %273 = dma.hbm_to_vmem [thread:$0]  (!%p491_p13), %s123_s29, 128, %s125_s3, %s113_s5  }
  0x20   : > { %p130_p2 = pnand %p259_p0, %p129_p1 }
  0x21   : > { %s512_s23 = sand.u32 (!%p130_p2), 1, %s401_s10  }
  0x22   : > { %133 = sbr.rel (%p130_p2) target bundleno = 55 (0x37), region = 28  ;;  %s260_s24 = sshll.u32 (!%p130_p2), %s512_s23, 3 }
  0x23   : > { %s136_s25 = scalar_lea.sflag (!%p130_p2), [#allocation3], %s512_s23  ;;  %s139_s26 = scalar_lea.vmem (!%p130_p2), [#allocation2], %s260_s24 }
  0x27   : > { %388 = dma.done.wait (%p469_p6), %s136_s25, 128  }
  0x28   : > { %390 = vsyncadd (%p469_p6), %s136_s25, 4294967168  ;;  %s263_s27 = sshll.u32 %s447_s13, 3  ;;  %s160_s3 = scalar_lea.vmem [#allocation5], %s260_s24  ;;  %v161_v0 = vld [vmem:[%s139_s26] sm:$0xff] }
  0x29   : > { %s179_s30 = scalar_lea.hbm %s558_s2, %s263_s27  ;;  %s181_s4 = sshll.u32 %s160_s3, 4  ;;  %v312_v1 = vld [vmem:[%s557_s1] ss:$0 sm:$0xff]  ;;  %s182_s4 = int_to_ptr.vmem [resolvable:$true] %s181_s4 }
  0x2a   : > { %s183_s5 = sshll.u32 %s179_s30, 4  ;;  %v166_v2 = vadd.f32 %v312_v1, %v161_v0  ;;  %s169_s20 = scalar_lea.sflag [#allocation4], %s512_s23  ;;  %s184_s5 = int_to_ptr.hbm [resolvable:$true] %s183_s5 }
  0x2b   : > { %s357_s8 = sshra.s32 %s184_s5, 4  ;;  %s363_s17 = scalar_lea.hbm %s558_s2, 16  ;;  %s358_s8 = int_to_ptr.hbm [resolvable:$true] %s357_s8 }
  0x2c   : > { %167 = vst [vmem:[%s160_s3] sm:$0xff] %v166_v2  ;;  %s359_s13 = scalar_lea.hbm %s358_s8, 8  ;;  %p364_p0 = scmp.lt.s32.totalorder %s358_s8, %s558_s2 }
  0x2d   : > { %p360_p6 = scmp.ne.s32.totalorder %s358_s8, %s359_s13  ;;  %p365_p1 = scmp.lt.s32.totalorder %s363_s17, %s359_s13 }
  0x2f   : > { %p361_p9 = pnand %p360_p6, %p476_p11  ;;  %p366_p3 = por %p365_p1, %p364_p0 }
  0x31   : > { %p362_p13 = pneg %p361_p9 }
  0x33   : > { %p367_p4 = pnand %p366_p3, %p362_p13 }
  0x35   : > { %370 = shalt.err (!%p367_p4)
}
  0x36   : > { %268 = dma.vmem_to_hbm [thread:$0]  (%p476_p11), %s182_s4, 128, %s184_s5, %s169_s20  }
  0x37 PF: > { %s195_s23 = sand.u32 1, %s397_s9   ;;  %p564_p7 = scmp.ge.s32.totalorder %s409_s12, 2 }
  0x38   : > { %s196_s25 = scalar_lea.sflag [#allocation4], %s195_s23 }
  0x39   : > { %p275_p5 = pnand %p564_p7, %p480_p12 }
  0x3b   : > { %p276_p8 = pneg %p275_p5 }
  0x3d   : > { %392 = dma.done.wait (%p276_p8), %s196_s25, 128  }
  0x3e   : > { %394 = vsyncadd (%p276_p8), %s196_s25, 4294967168  ;;  %p15_p10 = scmp.ge.s32.totalorder %s451_s15, 4   ;;  %s565_s9 = smov %s401_s10 }
  0x3f   : > { %s566_s10 = smov %s405_s11  ;;  %s567_s11 = smov %s463_s18 }
  0x40   : > { %s568_s12 = smov %s451_s15  ;;  %17 = sbr.rel (!%p15_p10) target bundleno = 5 (0x5), region = 73 }
  0x45   :  { %202 = vsyncpa [#allocation3], 1 }
  0x46   :  { %204 = vsyncpa [#allocation3 + $0x1], 1 }
  0x47   :  { %205 = vsyncpa [#allocation4], 1 }
  0x48   :  { %207 = vsyncpa [#allocation4 + $0x1], 1 }

</bundles_post_ra>
